<compile_context>
chip_gen: v7x
topology: tpu7x:2x2x1
jax: 0.10.0
libtpu: 0.0.40
codegen_flags: <defaults>
</compile_context>

<pallas_src>
import functools

import jax
import jax.numpy as jnp
from jax.experimental import pallas as pl
from jax.experimental.pallas import tpu as pltpu


# ----------------------------- Pallas kernel ---------------------------------
def _pointer_matrix_kernel(h_ref, t_ref, wbi2_ref, o_ref, u_ref):
    # h_ref  : (1, TQ, Dp) bf16   query-row slice of GELU(x Wh + bh)
    # t_ref  : (1, TK, Dp) bf16   key-row   slice of GELU(x Wt + bt)
    # wbi2   : (Dp, O*Dp)  bf16   wbi[o, i, j] laid out at wbi2[i, o*Dp + j]
    # o_ref  : (1, O, TQ, TK)
    # u_ref  : (O*TQ, Dp)  bf16   scratch, cached across the ki grid axis
    n_out, tq, tk = o_ref.shape[1], o_ref.shape[2], o_ref.shape[3]
    dp = t_ref.shape[2]

    # Stage 1 (once per (b, qi) tile, ki == 0):
    #   u[o*TQ + q, j] = sum_i h[q, i] * wbi[o, i, j]
    @pl.when(pl.program_id(2) == 0)
    def _():
        u = jnp.dot(h_ref[0], wbi2_ref[...],
                    preferred_element_type=jnp.float32).astype(jnp.bfloat16)  # (TQ, O*Dp)
        # Restack per-class lane-aligned slabs along rows -> (O*TQ, Dp).
        u_ref[...] = jnp.concatenate(
            [u[:, o * dp:(o + 1) * dp] for o in range(n_out)], axis=0)

    # Stage 2 (every ki): NT matmul, contract the shared Dp axis (no t.T):
    #   s[o*TQ + q, k] = sum_j u[o*TQ + q, j] * t[k, j]
    s = jax.lax.dot_general(u_ref[...], t_ref[0], (((1,), (1,)), ((), ())),
                            preferred_element_type=jnp.float32)               # (O*TQ, TK)

    # Single lane-dense whole-block store.
    o_ref[0] = s.reshape(n_out, tq, tk).astype(o_ref.dtype)


# ------------------------------- wrapper --------------------------------------
def _round_up(n, m):
    return ((n + m - 1) // m) * m


@functools.partial(jax.jit, static_argnames=("out_dtype",))
def pointer_matrix(x, wh, bh, wt, bt, wbi, *, out_dtype=jnp.float32):
    B, L, H = x.shape
    D = wh.shape[1]
    O = wbi.shape[0]

    # ---- hoisted projections + exact (erf) GELU, f32 math, bf16 handoff ----
    h = jax.nn.gelu(jnp.einsum("blh,hd->bld", x, wh) + bh, approximate=False)
    t = jax.nn.gelu(jnp.einsum("blh,hd->bld", x, wt) + bt, approximate=False)

    # ---- pad seq and feature dims to lane-friendly multiples of 128 ----
    Lp = _round_up(L, 128)
    Dp = _round_up(D, 128)
    h = jnp.pad(h, ((0, 0), (0, Lp - L), (0, Dp - D))).astype(jnp.bfloat16)
    t = jnp.pad(t, ((0, 0), (0, Lp - L), (0, Dp - D))).astype(jnp.bfloat16)
    # wbi (O, D, D) -> padded (O, Dp, Dp) -> (Dp, O*Dp): stage 1 is one matmul.
    wbi_p = jnp.pad(wbi, ((0, 0), (0, Dp - D), (0, Dp - D)))
    wbi2 = jnp.transpose(wbi_p, (1, 0, 2)).reshape(Dp, O * Dp).astype(jnp.bfloat16)

    # ---- tiling: TQ modest (stage-1 cached across ki), TK lane-dense ----
    TQ = 128
    TK = 256 if (Lp % 256 == 0) else 128
    nq, nk = Lp // TQ, Lp // TK

    # ---- VMEM budget (double-buffered blocks + scratch + live f32 result) ----
    out_isz = jnp.dtype(out_dtype).itemsize
    est = (2 * O * TQ * TK * out_isz      # double-buffered output block
           + 2 * TQ * Dp * 2              # h tile (db, bf16)
           + 2 * TK * Dp * 2              # t tile (db, bf16)
           + Dp * O * Dp * 2              # wbi2 (single-buffered)
           + O * TQ * Dp * 2              # u scratch
           + O * TQ * TK * 4)             # live f32 stage-2 result
    vmem_limit = int(min(max(est * 3 // 2 + (4 << 20), 32 << 20), 64 << 20))

    out = pl.pallas_call(
        _pointer_matrix_kernel,
        out_shape=jax.ShapeDtypeStruct((B, O, Lp, Lp), out_dtype),
        grid=(B, nq, nk),
        in_specs=[
            pl.BlockSpec((1, TQ, Dp), lambda b, qi, ki: (b, qi, 0)),   # h (query rows)
            pl.BlockSpec((1, TK, Dp), lambda b, qi, ki: (b, ki, 0)),   # t (key rows)
            pl.BlockSpec((Dp, O * Dp), lambda b, qi, ki: (0, 0),       # wbi2, constant
                         pipeline_mode=pl.Buffered(1)),                # -> single buffer
        ],
        out_specs=pl.BlockSpec((1, O, TQ, TK), lambda b, qi, ki: (b, 0, qi, ki)),
        scratch_shapes=[pltpu.VMEM((O * TQ, Dp), jnp.bfloat16)],       # u cache over ki
        compiler_params=pltpu.CompilerParams(
            dimension_semantics=("parallel", "parallel", "arbitrary"),
            vmem_limit_bytes=vmem_limit),
    )(h, t, wbi2)

    return out[:, :, :L, :L]


# --------------------------- pure-JAX reference --------------------------------
def pointer_matrix_ref(x, wh, bh, wt, bt, wbi):
    h = jax.nn.gelu(jnp.einsum("blh,hd->bld", x, wh) + bh, approximate=False)
    t = jax.nn.gelu(jnp.einsum("blh,hd->bld", x, wt) + bt, approximate=False)
    return jnp.einsum("bxi,oij,byj->boxy", h, wbi, t)


# TODO(synk): use_rope=True (sinusoidal RoPE mixing of h/t) and biaffine_bias=True
# (ones-column concat) are off by module defaults and are not implemented here;
# dropout=0 is a no-op in eval/forward.

if __name__ == "__main__":
    B, L, H, D, O = 2, 8, 32, 32, 2  # batch, seq, hidden_size, biaffine_size, cls_num

    key = jax.random.PRNGKey(0)
    kx, kwh, kbh, kwt, kbt, kwbi = jax.random.split(key, 6)

    x = jax.random.normal(kx, (B, L, H), dtype=jnp.float32)

    # Deterministic parameter init (shapes match the PyTorch module).
    lin_std = 1.0 / jnp.sqrt(jnp.float32(H))
    wh = jax.random.normal(kwh, (H, D), dtype=jnp.float32) * lin_std
    bh = jax.random.normal(kbh, (D,), dtype=jnp.float32) * lin_std
    wt = jax.random.normal(kwt, (H, D), dtype=jnp.float32) * lin_std
    bt = jax.random.normal(kbt, (D,), dtype=jnp.float32) * lin_std
    # Biaffine weight (O, D, D), xavier-normal-like std = sqrt(2/(fan_in+fan_out)).
    xav_std = jnp.sqrt(2.0 / jnp.float32(D * D + O * D))
    wbi = jax.random.normal(kwbi, (O, D, D), dtype=jnp.float32) * xav_std

    out = pointer_matrix(x, wh, bh, wt, bt, wbi)
    out = jax.block_until_ready(out)

    ref = pointer_matrix_ref(x, wh, bh, wt, bt, wbi)
    assert out.shape == (B, O, L, L), out.shape
    # bf16 matmul operands (f32 accumulation) -> tolerance loosened vs pure-f32.
    assert jnp.allclose(out, ref, atol=2e-2, rtol=2e-2), float(jnp.max(jnp.abs(out - ref)))

    print("KERNEL_OK")
</pallas_src>

<mosaic_0001>
module attributes {stable_mosaic.version = 11 : i64} {
  func.func @_pointer_matrix_kernel(%arg0: i32, %arg1: i32, %arg2: i32, %arg3: memref<1x128x128xbf16, #tpu.memory_space<vmem>>, %arg4: memref<1x128x128xbf16, #tpu.memory_space<vmem>>, %arg5: memref<128x256xbf16, #tpu.memory_space<vmem>>, %arg6: memref<1x2x128x128xf32, #tpu.memory_space<vmem>>, %arg7: memref<256x128xbf16, #tpu.memory_space<vmem>>) attributes {dimension_semantics = [#tpu.dimension_semantics<parallel>, #tpu.dimension_semantics<parallel>, #tpu.dimension_semantics<arbitrary>], iteration_bounds = array<i64: 2, 1, 1>, scalar_prefetch = 0 : i64, scratch_operands = 1 : i64, tpu.core_type = #tpu.core_type<tc>, window_params = [{transform_indices = @transform_0, window_bounds = array<i64: 1, 128, 128>}, {transform_indices = @transform_1, window_bounds = array<i64: 1, 128, 128>}, {pipeline_mode = #tpu.pipeline_mode<synchronous>, transform_indices = @transform_2, window_bounds = array<i64: 128, 256>}, {transform_indices = @transform_3, window_bounds = array<i64: 1, 2, 128, 128>}]} {
    %c0_i32 = arith.constant 0 : i32
    %0 = arith.cmpi eq, %arg2, %c0_i32 : i32
    %1 = arith.extui %0 : i1 to i32
    %c0_i32_0 = arith.constant 0 : i32
    %2 = arith.cmpi ne, %1, %c0_i32_0 : i32
    scf.if %2 {
      %c0_9 = arith.constant 0 : index
      %c0_10 = arith.constant 0 : index
      %c0_11 = arith.constant 0 : index
      %11 = vector.load %arg3[%c0_9, %c0_10, %c0_11] : memref<1x128x128xbf16, #tpu.memory_space<vmem>>, vector<1x128x128xbf16>
      %12 = vector.shape_cast %11 : vector<1x128x128xbf16> to vector<128x128xbf16>
      %c0_12 = arith.constant 0 : index
      %c0_13 = arith.constant 0 : index
      %13 = vector.load %arg5[%c0_12, %c0_13] : memref<128x256xbf16, #tpu.memory_space<vmem>>, vector<128x256xbf16>
      %cst_14 = arith.constant dense<0.000000e+00> : vector<128x256xf32>
      %14 = tpu.matmul %12, %13, %cst_14 {dimension_numbers = #tpu.dot_dimension_numbers<[1], [0], [0], [1], [0, 0, 1, 1], [], []>} : vector<128x128xbf16>, vector<128x256xbf16>, vector<128x256xf32> -> vector<128x256xf32>
      %15 = arith.truncf %14 : vector<128x256xf32> to vector<128x256xbf16>
      %16 = vector.extract_strided_slice %15 {offsets = [0, 0], sizes = [128, 128], strides = [1, 1]} : vector<128x256xbf16> to vector<128x128xbf16>
      %17 = vector.extract_strided_slice %15 {offsets = [0, 128], sizes = [128, 128], strides = [1, 1]} : vector<128x256xbf16> to vector<128x128xbf16>
      %18 = tpu.concatenate %16, %17 in 0 : vector<128x128xbf16>, vector<128x128xbf16> -> vector<256x128xbf16>
      %c0_15 = arith.constant 0 : index
      %c0_16 = arith.constant 0 : index
      %19 = vector.load %arg7[%c0_15, %c0_16] : memref<256x128xbf16, #tpu.memory_space<vmem>>, vector<256x128xbf16>
      tpu.vector_store %arg7[%c0_15, %c0_16], %18 {strides = array<i32>} : memref<256x128xbf16, #tpu.memory_space<vmem>>, vector<256x128xbf16>,
    } else {
    }
    %c0 = arith.constant 0 : index
    %c0_1 = arith.constant 0 : index
    %3 = vector.load %arg7[%c0, %c0_1] : memref<256x128xbf16, #tpu.memory_space<vmem>>, vector<256x128xbf16>
    %c0_2 = arith.constant 0 : index
    %c0_3 = arith.constant 0 : index
    %c0_4 = arith.constant 0 : index
    %4 = vector.load %arg4[%c0_2, %c0_3, %c0_4] : memref<1x128x128xbf16, #tpu.memory_space<vmem>>, vector<1x128x128xbf16>
    %5 = vector.shape_cast %4 : vector<1x128x128xbf16> to vector<128x128xbf16>
    %cst = arith.constant dense<0.000000e+00> : vector<256x128xf32>
    %6 = tpu.matmul %3, %5, %cst {dimension_numbers = #tpu.dot_dimension_numbers<[1], [1], [0], [0], [0, 0, 1, 0], [], []>} : vector<256x128xbf16>, vector<128x128xbf16>, vector<256x128xf32> -> vector<256x128xf32>
    %7 = vector.shape_cast %6 : vector<256x128xf32> to vector<2x128x128xf32>
    %c0_5 = arith.constant 0 : index
    %c0_6 = arith.constant 0 : index
    %c0_7 = arith.constant 0 : index
    %c0_8 = arith.constant 0 : index
    %8 = vector.load %arg6[%c0_5, %c0_6, %c0_7, %c0_8] : memref<1x2x128x128xf32, #tpu.memory_space<vmem>>, vector<1x2x128x128xf32>
    %9 = vector.shape_cast %8 : vector<1x2x128x128xf32> to vector<2x128x128xf32>
    %10 = vector.shape_cast %7 : vector<2x128x128xf32> to vector<1x2x128x128xf32>
    tpu.vector_store %arg6[%c0_5, %c0_6, %c0_7, %c0_8], %10 {strides = array<i32>} : memref<1x2x128x128xf32, #tpu.memory_space<vmem>>, vector<1x2x128x128xf32>,
    return
  }
  func.func @transform_0(%arg0: i32, %arg1: i32, %arg2: i32) -> (i32, i32, i32) {
    %c0_i32 = arith.constant 0 : i32
    %c0_i32_0 = arith.constant 0 : i32
    return %arg0, %arg1, %c0_i32 : i32, i32, i32
  }
  func.func @transform_1(%arg0: i32, %arg1: i32, %arg2: i32) -> (i32, i32, i32) {
    %c0_i32 = arith.constant 0 : i32
    %c0_i32_0 = arith.constant 0 : i32
    return %arg0, %arg2, %c0_i32 : i32, i32, i32
  }
  func.func @transform_2(%arg0: i32, %arg1: i32, %arg2: i32) -> (i32, i32) {
    %c0_i32 = arith.constant 0 : i32
    %c0_i32_0 = arith.constant 0 : i32
    %c0_i32_1 = arith.constant 0 : i32
    return %c0_i32, %c0_i32_0 : i32, i32
  }
  func.func @transform_3(%arg0: i32, %arg1: i32, %arg2: i32) -> (i32, i32, i32, i32) {
    %c0_i32 = arith.constant 0 : i32
    %c0_i32_0 = arith.constant 0 : i32
    return %arg0, %c0_i32, %arg1, %arg2 : i32, i32, i32, i32
  }
}

</mosaic_0001>

<bundles_post_ra>
// kernel: pointer_matrix.1
= control target key start
LH: loop header
LB: loop body
LE: loop exit
PB: predicated region body
PF: predicated region fallthrough
CT: control target
= control target key end

     0   :  { %s1208_s12 = smov 0   ;;  %s1210_s13 = smov 0   ;;  %s1358_s0 = inlined_call_operand.vmem [shape: bf16[2,128,128], index: 0, kind: input, shape index: {}]   ;;  %s1359_s1 = inlined_call_operand.vmem [shape: bf16[2,128,128], index: 1, kind: input, shape index: {}]   ;;  %s1360_s2 = inlined_call_operand.vmem [shape: bf16[128,256], index: 2, kind: input, shape index: {}]   ;;  %s1361_s3 = inlined_call_operand.vmem [shape: f32[2,2,128,128], index: 3, kind: output, shape index: {}]  }
   0x1   :  { %s1212_s14 = smov 0  }
   0x2 LB: > { %s32_s15 = sadd.s32 1, %s1181_s13  ;;  %p966_p0 = scmp.ge.s32.totalorder %s1185_s14, 1  ;;  %s1185_s14 = sphi %s1212_s14, %s13_s14   ;;  %s1181_s13 = sphi %s1210_s13, %s1363_s13   ;;  %s1177_s12 = sphi %s1208_s12, %s1362_s12  }
   0x3   : > { %p34_p1 = scmp.ge.s32.totalorder %s32_s15, 2  ;;  %p184_p2 = scmp.lt.s32.totalorder %s1185_s14, 3 }
   0x5   : > { %s1365_s15 = smov (%p34_p1, %s32_s15), 0  ;;  %p185_p3 = pnand %p966_p0, %p184_p2 }
   0x6   : > { %v1123_v0 = vld [vmem:[%s1360_s2 + $0x4] ss:$8 sps:$4 sm:$0xff] (!%p185_p3)   ;;  %p229_p4 = scmp.lt.s32.totalorder (!%p185_p3), %s1177_s12, 1  ;;  %v1125_v1 = vld [vmem:[%s1360_s2] ss:$8 sps:$4 sm:$0xff] (!%p185_p3)   ;;  %v1187_v2 = vmov (!%p185_p3), 0  }
   0x7   : > { %188 = sbr.rel (%p185_p3) target bundleno = 559 (0x22f), region = 32  ;;  %458 = vmatprep.mubr.bf16.mxu0 (!%p185_p3), %v1187_v2  ;;  %426 = vmatprep.subr.bf16.mxu0 (!%p185_p3), %v1123_v0  ;;  %v1126_v3 = vld [vmem:[%s1360_s2 + $0x14] ss:$8 sps:$4 sm:$0xff] (!%p185_p3)   ;;  %v1128_v4 = vld [vmem:[%s1360_s2 + $0x10] ss:$8 sps:$4 sm:$0xff] (!%p185_p3)  }
   0x8   : > { %427 = vmatpush1.bf16.msra.mxu0 (!%p185_p3), %v1125_v1  ;;  %v1129_v5 = vld [vmem:[%s1360_s2 + $0x24] ss:$8 sps:$4 sm:$0xff] (!%p185_p3)   ;;  %v1131_v6 = vld [vmem:[%s1360_s2 + $0x20] ss:$8 sps:$4 sm:$0xff] (!%p185_p3)   ;;  %v1132_v7 = vld [vmem:[%s1360_s2 + $0x34] ss:$8 sps:$4 sm:$0xff] (!%p185_p3)  }
   0x9   : > { %428 = vmatprep.subr.bf16.mxu0 (!%p185_p3), %v1126_v3  ;;  %v1134_v8 = vld [vmem:[%s1360_s2 + $0x30] ss:$8 sps:$4 sm:$0xff] (!%p185_p3)   ;;  %v1135_v9 = vld [vmem:[%s1360_s2 + $0x44] ss:$8 sps:$4 sm:$0xff] (!%p185_p3)   ;;  %v1137_v10 = vld [vmem:[%s1360_s2 + $0x40] ss:$8 sps:$4 sm:$0xff] (!%p185_p3)  }
   0xa   : > { %v1138_v11 = vld [vmem:[%s1360_s2 + $0x54] ss:$8 sps:$4 sm:$0xff] (!%p185_p3)   ;;  %v1140_v12 = vld [vmem:[%s1360_s2 + $0x50] ss:$8 sps:$4 sm:$0xff] (!%p185_p3)   ;;  %v1141_v14 = vld [vmem:[%s1360_s2 + $0x64] ss:$8 sps:$4 sm:$0xff] (!%p185_p3)  }
   0xb   : > { %v1143_v16 = vld [vmem:[%s1360_s2 + $0x60] ss:$8 sps:$4 sm:$0xff] (!%p185_p3)   ;;  %v1144_v17 = vld [vmem:[%s1360_s2 + $0x74] ss:$8 sps:$4 sm:$0xff] (!%p185_p3)   ;;  %v1146_v18 = vld [vmem:[%s1360_s2 + $0x70] ss:$8 sps:$4 sm:$0xff] (!%p185_p3)  }
   0xc   : > { %429 = vmatpush1.bf16.msra.mxu0 (!%p185_p3), %v1128_v4 }
   0xd   : > { %430 = vmatprep.subr.bf16.mxu0 (!%p185_p3), %v1129_v5 }
   0xe   : > { %s1367_s12 = smov (!%p229_p4, %s1177_s12), 1 }
   0xf   : > { %s1007_s26 = sshll.u32 %s1367_s12, 6  ;;  %s1009_s5 = sshll.u32 %s1367_s12, 8 }
  0x10   : > { %s1254_s6 = scalar_lea.vmem %s1358_s0, %s1007_s26  ;;  %431 = vmatpush1.bf16.msra.mxu0 %v1131_v6  ;;  %s1271_s21 = scalar_lea.vmem %s1359_s1, %s1007_s26 }
  0x11   : > { %432 = vmatprep.subr.bf16.mxu0 %v1132_v7  ;;  %v1155_v13 = vld [vmem:[%s1271_s21] sm:$0xff]   ;;  %v1156_v15 = vld [vmem:[%s1271_s21 + $0x8] sm:$0xff]   ;;  %v1157_v19 = vld [vmem:[%s1271_s21 + $0x10] sm:$0xff]   ;;  %s1315_s8 = scalar_lea.vmem %s1361_s3, %s1009_s5 }
  0x12   : > { %1082 = vmatprep.subr.bf16.mxu1 %v1155_v13  ;;  %v1147_v20 = vld [vmem:[%s1254_s6] sm:$0xff]   ;;  %v1158_v21 = vld [vmem:[%s1271_s21 + $0x18] sm:$0xff]   ;;  %v1148_v22 = vld [vmem:[%s1254_s6 + $0x8] sm:$0xff]  }
  0x13   : > { %1090 = vmatpush3.bf16.xpose.msra.mxu1 %v1155_v13  ;;  %v1159_v23 = vld [vmem:[%s1271_s21 + $0x20] sm:$0xff]   ;;  %v1149_v24 = vld [vmem:[%s1254_s6 + $0x10] sm:$0xff]   ;;  %v1160_v25 = vld [vmem:[%s1271_s21 + $0x28] sm:$0xff]  }
  0x14   : > { %433 = vmatpush1.bf16.msra.mxu0 %v1134_v8  ;;  %1083 = vmatprep.subr.bf16.mxu1 %v1156_v15  ;;  %v1150_v26 = vld [vmem:[%s1254_s6 + $0x18] sm:$0xff]   ;;  %v1161_v27 = vld [vmem:[%s1271_s21 + $0x30] sm:$0xff]   ;;  %v1151_v28 = vld [vmem:[%s1254_s6 + $0x20] sm:$0xff]  }
  0x15   : > { %434 = vmatprep.subr.bf16.mxu0 %v1135_v9  ;;  %v1152_v29 = vld [vmem:[%s1254_s6 + $0x28] sm:$0xff]   ;;  %v1153_v30 = vld [vmem:[%s1254_s6 + $0x30] sm:$0xff]   ;;  %v1154_v31 = vld [vmem:[%s1254_s6 + $0x38] sm:$0xff]  }
  0x16   : > { %v1162_v32 = vld [vmem:[%s1271_s21 + $0x38] sm:$0xff]  }
  0x18   : > { %435 = vmatpush1.bf16.msra.mxu0 %v1137_v10 }
  0x19   : > { %436 = vmatprep.subr.bf16.mxu0 %v1138_v11 }
  0x1b   : > { %1091 = vmatpush3.bf16.xpose.msra.mxu1 %v1156_v15 }
  0x1c   : > { %437 = vmatpush1.bf16.msra.mxu0 %v1140_v12  ;;  %1084 = vmatprep.subr.bf16.mxu1 %v1157_v19 }
  0x1d   : > { %438 = vmatprep.subr.bf16.mxu0 %v1141_v14 }
  0x20   : > { %439 = vmatpush1.bf16.msra.mxu0 %v1143_v16 }
  0x21   : > { %440 = vmatprep.subr.bf16.mxu0 %v1144_v17 }
  0x23   : > { %1092 = vmatpush3.bf16.xpose.msra.mxu1 %v1157_v19 }
  0x24   : > { %441 = vmatpush1.bf16.msra.mxu0 %v1146_v18  ;;  %1085 = vmatprep.subr.bf16.mxu1 %v1158_v21 }
  0x25   : > { %1034 = vmatprep.subr.bf16.mxu0 %v1155_v13 }
  0x27   : > { %459 = vmatmul.mubr.bf16.vlgmr.msra.gmra.mrb[0].mxu0 %v1147_v20 }
  0x28   : > { %468 = vmatprep.mubr.bf16.mxu0 %v1187_v2 }
  0x2b   : > { %1093 = vmatpush3.bf16.xpose.msra.mxu1 %v1158_v21 }
  0x2c   : > { %1086 = vmatprep.subr.bf16.mxu1 %v1159_v23 }
  0x2d   : > { %1035 = vmatpush3.bf16.xpose.msra.mxu0 %v1155_v13 }
  0x2e   : > { %1036 = vmatprep.subr.bf16.mxu0 %v1156_v15 }
  0x2f   : > { %469 = vmatmul.mubr.bf16.gmra.mrb[4].mxu0 %v1148_v22 }
  0x30   : > { %478 = vmatprep.mubr.bf16.mxu0 %v1187_v2 }
  0x33   : > { %1094 = vmatpush3.bf16.xpose.msra.mxu1 %v1159_v23 }
  0x34   : > { %1087 = vmatprep.subr.bf16.mxu1 %v1160_v25 }
  0x35   : > { %1037 = vmatpush3.bf16.xpose.msra.mxu0 %v1156_v15 }
  0x36   : > { %1038 = vmatprep.subr.bf16.mxu0 %v1157_v19 }
  0x37   : > { %479 = vmatmul.mubr.bf16.gmra.mrb[8].mxu0 %v1149_v24 }
  0x38   : > { %488 = vmatprep.mubr.bf16.mxu0 %v1187_v2 }
  0x3b   : > { %1095 = vmatpush3.bf16.xpose.msra.mxu1 %v1160_v25 }
  0x3c   : > { %1088 = vmatprep.subr.bf16.mxu1 %v1161_v27 }
  0x3d   : > { %1039 = vmatpush3.bf16.xpose.msra.mxu0 %v1157_v19 }
  0x3e   : > { %1040 = vmatprep.subr.bf16.mxu0 %v1158_v21 }
  0x3f   : > { %489 = vmatmul.mubr.bf16.gmra.mrb[12].mxu0 %v1150_v26 }
  0x40   : > { %498 = vmatprep.mubr.bf16.mxu0 %v1187_v2 }
  0x43   : > { %1096 = vmatpush3.bf16.xpose.msra.mxu1 %v1161_v27 }
  0x44   : > { %1089 = vmatprep.subr.bf16.mxu1 %v1162_v32 }
  0x45   : > { %1041 = vmatpush3.bf16.xpose.msra.mxu0 %v1158_v21 }
  0x46   : > { %1042 = vmatprep.subr.bf16.mxu0 %v1159_v23 }
  0x47   : > { %499 = vmatmul.mubr.bf16.gmra.mrb[16].mxu0 %v1151_v28 }
  0x48   : > { %508 = vmatprep.mubr.bf16.mxu0 %v1187_v2 }
  0x4b   : > { %1097 = vmatpush3.bf16.xpose.msra.mxu1 %v1162_v32 }
  0x4d   : > { %1043 = vmatpush3.bf16.xpose.msra.mxu0 %v1159_v23 }
  0x4e   : > { %1044 = vmatprep.subr.bf16.mxu0 %v1160_v25 }
  0x4f   : > { %509 = vmatmul.mubr.bf16.gmra.mrb[20].mxu0 %v1152_v29 }
  0x50   : > { %518 = vmatprep.mubr.bf16.mxu0 %v1187_v2 }
  0x55   : > { %1045 = vmatpush3.bf16.xpose.msra.mxu0 %v1160_v25 }
  0x56   : > { %1046 = vmatprep.subr.bf16.mxu0 %v1161_v27 }
  0x57   : > { %519 = vmatmul.mubr.bf16.gmra.mrb[24].mxu0 %v1153_v30 }
  0x58   : > { %528 = vmatprep.mubr.bf16.mxu0 %v1187_v2 }
  0x5d   : > { %1047 = vmatpush3.bf16.xpose.msra.mxu0 %v1161_v27 }
  0x5e   : > { %1048 = vmatprep.subr.bf16.mxu0 %v1162_v32 }
  0x5f   : > { %529 = vmatmul.mubr.bf16.gmra.mrb[28].mxu0 %v1154_v31 }
  0x65   : > { %1049 = vmatpush3.bf16.xpose.msra.mxu0 %v1162_v32 }
  0xfa   : > { %v460_v33 = vpop.f32.mrb[0].mxu0 }
  0xfb   : > { %v462_v34 = vpop.f32.mrb[1].mxu0 }
  0xfc   : > { %v464_v35 = vpop.f32.mrb[2].mxu0 }
  0xfd   : > { %v539_v36 = vpack.c.bf16 %v464_v35, %v460_v33  ;;  %v466_v37 = vpop.f32.mrb[3].mxu0 }
  0xfe   : > { %v540_v38 = vpack.c.bf16 %v466_v37, %v462_v34 }
  0xff   : > { %1050 = vmatprep.mubr.bf16.mxu0 %v539_v36 }
 0x102   : > { %v470_v39 = vpop.f32.mrb[4].mxu0 }
 0x103   : > { %v472_v40 = vpop.f32.mrb[5].mxu0 }
 0x104   : > { %v474_v41 = vpop.f32.mrb[6].mxu0 }
 0x105   : > { %v541_v42 = vpack.c.bf16 %v474_v41, %v470_v39  ;;  %v476_v43 = vpop.f32.mrb[7].mxu0 }
 0x106   : > { %v542_v44 = vpack.c.bf16 %v476_v43, %v472_v40 }
 0x107   : > { %1051 = vmatmul.mubr.bf16.vlgmr.msra.gmra.mrb[32].mxu0 %v541_v42 }
 0x10a   : > { %v480_v45 = vpop.f32.mrb[8].mxu0 }
 0x10b   : > { %v482_v46 = vpop.f32.mrb[9].mxu0 }
 0x10c   : > { %v484_v47 = vpop.f32.mrb[10].mxu0 }
 0x10d   : > { %v543_v48 = vpack.c.bf16 %v484_v47, %v480_v45  ;;  %v486_v49 = vpop.f32.mrb[11].mxu0 }
 0x10e   : > { %v544_v50 = vpack.c.bf16 %v486_v49, %v482_v46 }
 0x10f   : > { %1054 = vmatprep.mubr.bf16.mxu0 %v543_v48 }
 0x112   : > { %v490_v51 = vpop.f32.mrb[12].mxu0 }
 0x113   : > { %v492_v52 = vpop.f32.mrb[13].mxu0 }
 0x114   : > { %v494_v53 = vpop.f32.mrb[14].mxu0 }
 0x115   : > { %v545_v54 = vpack.c.bf16 %v494_v53, %v490_v51  ;;  %v496_v55 = vpop.f32.mrb[15].mxu0 }
 0x116   : > { %v546_v56 = vpack.c.bf16 %v496_v55, %v492_v52 }
 0x117   : > { %1055 = vmatmul.mubr.bf16.gmra.mrb[36].mxu0 %v545_v54 }
 0x11a   : > { %v500_v57 = vpop.f32.mrb[16].mxu0 }
 0x11b   : > { %v502_v58 = vpop.f32.mrb[17].mxu0 }
 0x11c   : > { %v504_v59 = vpop.f32.mrb[18].mxu0 }
 0x11d   : > { %v506_v60 = vpop.f32.mrb[19].mxu0  ;;  %v547_v61 = vpack.c.bf16 %v504_v59, %v500_v57 }
 0x11e   : > { %v548_v62 = vpack.c.bf16 %v506_v60, %v502_v58 }
 0x11f   : > { %1058 = vmatprep.mubr.bf16.mxu1 %v547_v61 }
 0x122   : > { %v510_v63 = vpop.f32.mrb[20].mxu0 }
 0x123   : > { %v512_v0 = vpop.f32.mrb[21].mxu0 }
 0x124   : > { %v514_v1 = vpop.f32.mrb[22].mxu0 }
 0x125   : > { %v549_v2 = vpack.c.bf16 %v514_v1, %v510_v63  ;;  %v516_v3 = vpop.f32.mrb[23].mxu0 }
 0x126   : > { %v550_v4 = vpack.c.bf16 %v516_v3, %v512_v0 }
 0x127   : > { %1059 = vmatmul.mubr.bf16.vlgmr.msra.gmra.mrb[0].mxu1 %v549_v2 }
 0x12a   : > { %v520_v5 = vpop.f32.mrb[24].mxu0 }
 0x12b   : > { %v522_v6 = vpop.f32.mrb[25].mxu0 }
 0x12c   : > { %v524_v7 = vpop.f32.mrb[26].mxu0 }
 0x12d   : > { %v551_v8 = vpack.c.bf16 %v524_v7, %v520_v5  ;;  %v526_v9 = vpop.f32.mrb[27].mxu0 }
 0x12e   : > { %v552_v10 = vpack.c.bf16 %v526_v9, %v522_v6 }
 0x12f   : > { %1062 = vmatprep.mubr.bf16.mxu1 %v551_v8 }
 0x132   : > { %v530_v11 = vpop.f32.mrb[28].mxu0 }
 0x133   : > { %v532_v12 = vpop.f32.mrb[29].mxu0 }
 0x134   : > { %v534_v13 = vpop.f32.mrb[30].mxu0 }
 0x135   : > { %v553_v14 = vpack.c.bf16 %v534_v13, %v530_v11  ;;  %v536_v15 = vpop.f32.mrb[31].mxu0 }
 0x136   : > { %v554_v16 = vpack.c.bf16 %v536_v15, %v532_v12 }
 0x137   : > { %1063 = vmatmul.mubr.bf16.gmra.mrb[4].mxu1 %v553_v14 }
 0x138   : > { %1066 = vmatprep.mubr.bf16.mxu1 %v540_v38 }
 0x13f   : > { %1067 = vmatmul.mubr.bf16.gmra.mrb[8].mxu1 %v542_v44 }
 0x140   : > { %1070 = vmatprep.mubr.bf16.mxu1 %v544_v50 }
 0x147   : > { %1071 = vmatmul.mubr.bf16.gmra.mrb[12].mxu1 %v546_v56 }
 0x148   : > { %1074 = vmatprep.mubr.bf16.mxu1 %v548_v62 }
 0x14f   : > { %1075 = vmatmul.mubr.bf16.gmra.mrb[16].mxu1 %v550_v4 }
 0x150   : > { %1078 = vmatprep.mubr.bf16.mxu1 %v552_v10 }
 0x157   : > { %1079 = vmatmul.mubr.bf16.gmra.mrb[20].mxu1 %v554_v16 }
 0x1da   : > { %v1052_v17 = vpop.f32.mrb[32].mxu0 }
 0x1db   : > { %814 = vst [vmem:[%s1315_s8 + $0x10] sm:$0xff] %v1052_v17  ;;  %v685_v18 = vpop.f32.mrb[33].mxu0 }
 0x1dc   : > { %812 = vst [vmem:[%s1315_s8] sm:$0xff] %v685_v18  ;;  %v1053_v19 = vpop.f32.mrb[34].mxu0 }
 0x1dd   : > { %815 = vst [vmem:[%s1315_s8 + $0x18] sm:$0xff] %v1053_v19  ;;  %v688_v20 = vpop.f32.mrb[35].mxu0 }
 0x1de   : > { %813 = vst [vmem:[%s1315_s8 + $0x8] sm:$0xff] %v688_v20 }
 0x1ea   : > { %v1056_v21 = vpop.f32.mrb[36].mxu0 }
 0x1eb   : > { %818 = vst [vmem:[%s1315_s8 + $0x30] sm:$0xff] %v1056_v21  ;;  %v701_v22 = vpop.f32.mrb[37].mxu0 }
 0x1ec   : > { %816 = vst [vmem:[%s1315_s8 + $0x20] sm:$0xff] %v701_v22  ;;  %v1057_v23 = vpop.f32.mrb[38].mxu0 }
 0x1ed   : > { %819 = vst [vmem:[%s1315_s8 + $0x38] sm:$0xff] %v1057_v23  ;;  %v704_v24 = vpop.f32.mrb[39].mxu0 }
 0x1ee   : > { %817 = vst [vmem:[%s1315_s8 + $0x28] sm:$0xff] %v704_v24 }
 0x1fa   : > { %v1060_v25 = vpop.f32.mrb[0].mxu1 }
 0x1fb   : > { %822 = vst [vmem:[%s1315_s8 + $0x50] sm:$0xff] %v1060_v25  ;;  %v717_v26 = vpop.f32.mrb[1].mxu1 }
 0x1fc   : > { %820 = vst [vmem:[%s1315_s8 + $0x40] sm:$0xff] %v717_v26  ;;  %v1061_v27 = vpop.f32.mrb[2].mxu1 }
 0x1fd   : > { %823 = vst [vmem:[%s1315_s8 + $0x58] sm:$0xff] %v1061_v27  ;;  %v720_v28 = vpop.f32.mrb[3].mxu1 }
 0x1fe   : > { %821 = vst [vmem:[%s1315_s8 + $0x48] sm:$0xff] %v720_v28 }
 0x20a   : > { %v1064_v29 = vpop.f32.mrb[4].mxu1 }
 0x20b   : > { %826 = vst [vmem:[%s1315_s8 + $0x70] sm:$0xff] %v1064_v29  ;;  %v733_v30 = vpop.f32.mrb[5].mxu1 }
 0x20c   : > { %824 = vst [vmem:[%s1315_s8 + $0x60] sm:$0xff] %v733_v30  ;;  %v1065_v31 = vpop.f32.mrb[6].mxu1 }
 0x20d   : > { %827 = vst [vmem:[%s1315_s8 + $0x78] sm:$0xff] %v1065_v31  ;;  %v736_v32 = vpop.f32.mrb[7].mxu1 }
 0x20e   : > { %825 = vst [vmem:[%s1315_s8 + $0x68] sm:$0xff] %v736_v32 }
 0x212   : > { %v1068_v33 = vpop.f32.mrb[8].mxu1 }
 0x213   : > { %830 = vst [vmem:[%s1315_s8 + $0x90] sm:$0xff] %v1068_v33  ;;  %v749_v34 = vpop.f32.mrb[9].mxu1 }
 0x214   : > { %828 = vst [vmem:[%s1315_s8 + $0x80] sm:$0xff] %v749_v34  ;;  %v1069_v35 = vpop.f32.mrb[10].mxu1 }
 0x215   : > { %831 = vst [vmem:[%s1315_s8 + $0x98] sm:$0xff] %v1069_v35  ;;  %v752_v36 = vpop.f32.mrb[11].mxu1 }
 0x216   : > { %829 = vst [vmem:[%s1315_s8 + $0x88] sm:$0xff] %v752_v36 }
 0x21a   : > { %v1072_v37 = vpop.f32.mrb[12].mxu1 }
 0x21b   : > { %834 = vst [vmem:[%s1315_s8 + $0xb0] sm:$0xff] %v1072_v37  ;;  %v765_v38 = vpop.f32.mrb[13].mxu1 }
 0x21c   : > { %832 = vst [vmem:[%s1315_s8 + $0xa0] sm:$0xff] %v765_v38  ;;  %v1073_v39 = vpop.f32.mrb[14].mxu1 }
 0x21d   : > { %835 = vst [vmem:[%s1315_s8 + $0xb8] sm:$0xff] %v1073_v39  ;;  %v768_v40 = vpop.f32.mrb[15].mxu1 }
 0x21e   : > { %833 = vst [vmem:[%s1315_s8 + $0xa8] sm:$0xff] %v768_v40 }
 0x222   : > { %v1076_v41 = vpop.f32.mrb[16].mxu1 }
 0x223   : > { %838 = vst [vmem:[%s1315_s8 + $0xd0] sm:$0xff] %v1076_v41  ;;  %v781_v42 = vpop.f32.mrb[17].mxu1 }
 0x224   : > { %836 = vst [vmem:[%s1315_s8 + $0xc0] sm:$0xff] %v781_v42  ;;  %v1077_v43 = vpop.f32.mrb[18].mxu1 }
 0x225   : > { %839 = vst [vmem:[%s1315_s8 + $0xd8] sm:$0xff] %v1077_v43  ;;  %v784_v44 = vpop.f32.mrb[19].mxu1 }
 0x226   : > { %837 = vst [vmem:[%s1315_s8 + $0xc8] sm:$0xff] %v784_v44 }
 0x22a   : > { %v1080_v45 = vpop.f32.mrb[20].mxu1 }
 0x22b   : > { %842 = vst [vmem:[%s1315_s8 + $0xf0] sm:$0xff] %v1080_v45  ;;  %v797_v46 = vpop.f32.mrb[21].mxu1 }
 0x22c   : > { %840 = vst [vmem:[%s1315_s8 + $0xe0] sm:$0xff] %v797_v46  ;;  %v1081_v47 = vpop.f32.mrb[22].mxu1 }
 0x22d   : > { %843 = vst [vmem:[%s1315_s8 + $0xf8] sm:$0xff] %v1081_v47  ;;  %v800_v48 = vpop.f32.mrb[23].mxu1 }
 0x22e   : > { %841 = vst [vmem:[%s1315_s8 + $0xe8] sm:$0xff] %v800_v48 }
 0x22f PF: > { %s13_s14 = sadd.s32 1, %s1185_s14   ;;  %s1362_s12 = smov %s1181_s13 }
 0x230   : > { %p10_p5 = scmp.ge.s32.totalorder %s13_s14, 4   ;;  %s1363_s13 = smov %s1365_s15 }
 0x232   :  { %12 = sbr.rel (!%p10_p5) target bundleno = 2 (0x2), region = 69 }

</bundles_post_ra>
